<compile_context>
chip_gen: v6e
topology: v6e:2x2x1
jax: 0.10.0
libtpu: 0.0.40
codegen_flags: <defaults>
</compile_context>

<pallas_src>
import jax
import jax.numpy as jnp
from jax.experimental import pallas as pl
from jax.experimental.pallas import tpu as pltpu


def _rgb2sat_kernel(x_ref, o_ref):
    # x_ref block: (1, C, T, L); o_ref block: (1, 1, T, L)
    # Algebraic fold of the reference:
    #   x' = (x+1)/2 ; sat = 1 - min(x') / max(max(x'), 1e-8) ; out = 2*sat - 1
    #   == 1 - 2*(min(x)+1) / max(max(x)+1, 2e-8)
    # This drops the per-element (x+1)/2 over all C channels and the final *2-1.
    x = x_ref[...]
    # Channel axis is a leading (non-minor) dim -> pure elementwise VPU min/max
    # of C vreg slabs, no cross-lane XLU reduction.
    x_min = jnp.min(x, axis=1, keepdims=True)
    x_max = jnp.max(x, axis=1, keepdims=True)
    denom = jnp.maximum(x_max + 1.0, 2e-8)
    o_ref[...] = (1.0 - 2.0 * (x_min + 1.0) / denom).astype(o_ref.dtype)


def rgb2saturation(x):
    """x: (N, C, H, W) float -> (N, 1, H, W)."""
    N, C, H, W = x.shape
    HW = H * W

    if HW % 128 == 0:
        # Lane-dense path: flatten spatial dims to (rows, 128) so the minor dim
        # fills a full 128-lane vreg (unmasked stores), then tile the row axis.
        # Per-block footprint: 3 MiB input + 1 MiB output (f32, tile_rows=2048),
        # so double-buffered VMEM stays well under v7x's 64 MiB / 32 MiB scoped
        # default while hitting the 2-8 MiB streaming sweet spot on v5e/v6e.
        rows = HW // 128
        x2 = x.reshape(N, C, rows, 128)
        target_rows = 2048  # 2048 * 128 lanes * 4 B = 1 MiB per channel plane
        tile_rows = rows if rows <= target_rows else target_rows
        grid = (N, pl.cdiv(rows, tile_rows))
        out = pl.pallas_call(
            _rgb2sat_kernel,
            out_shape=jax.ShapeDtypeStruct((N, 1, rows, 128), x.dtype),
            grid=grid,
            in_specs=[pl.BlockSpec((1, C, tile_rows, 128),
                                   lambda n, t: (n, 0, t, 0))],
            out_specs=pl.BlockSpec((1, 1, tile_rows, 128),
                                   lambda n, t: (n, 0, t, 0)),
            # Two independent axes -> shardable across v7x's 2 TensorCores even
            # for tiny N; neutral on single-TC v5e/v6e.
            compiler_params=pltpu.CompilerParams(
                dimension_semantics=("parallel", "parallel")),
        )(x2)
        return out.reshape(N, 1, H, W)

    # Fallback for spatial sizes not divisible by 128: whole image per step
    # (full-extent last two dims satisfy the (8,128) block constraint).
    return pl.pallas_call(
        _rgb2sat_kernel,
        out_shape=jax.ShapeDtypeStruct((N, 1, H, W), x.dtype),
        grid=(N,),
        in_specs=[pl.BlockSpec((1, C, H, W), lambda n: (n, 0, 0, 0))],
        out_specs=pl.BlockSpec((1, 1, H, W), lambda n: (n, 0, 0, 0)),
        compiler_params=pltpu.CompilerParams(
            dimension_semantics=("parallel",)),
    )(x)


def _reference(x):
    x = (x + 1.0) / 2.0
    x_min = jnp.min(x, axis=1, keepdims=True)
    x_max = jnp.max(x, axis=1, keepdims=True)
    x_sat = 1.0 - x_min / jnp.maximum(x_max, 1e-8)
    return x_sat * 2.0 - 1.0


if __name__ == "__main__":
    key = jax.random.PRNGKey(0)
    # RGB image batch in [-1, 1], NCHW
    x = jax.random.uniform(key, (2, 3, 16, 16), dtype=jnp.float32,
                           minval=-1.0, maxval=1.0)

    out = jax.block_until_ready(rgb2saturation(x))
    ref = _reference(x)

    assert out.shape == (2, 1, 16, 16)
    assert jnp.allclose(out, ref, atol=1e-5, rtol=1e-5)
    print("KERNEL_OK")
</pallas_src>

<mosaic_0001>
module attributes {stable_mosaic.version = 11 : i64} {
  func.func @_rgb2sat_kernel(%arg0: i32, %arg1: i32, %arg2: memref<1x3x2x128xf32, #tpu.memory_space<vmem>>, %arg3: memref<1x1x2x128xf32, #tpu.memory_space<vmem>>) attributes {dimension_semantics = [#tpu.dimension_semantics<parallel>, #tpu.dimension_semantics<parallel>], iteration_bounds = array<i64: 2, 1>, scalar_prefetch = 0 : i64, scratch_operands = 0 : i64, tpu.core_type = #tpu.core_type<tc>, window_params = [{transform_indices = @transform_0, window_bounds = array<i64: 1, 3, 2, 128>}, {transform_indices = @transform_1, window_bounds = array<i64: 1, 1, 2, 128>}]} {
    %c0 = arith.constant 0 : index
    %c0_0 = arith.constant 0 : index
    %c0_1 = arith.constant 0 : index
    %c0_2 = arith.constant 0 : index
    %0 = vector.load %arg2[%c0, %c0_0, %c0_1, %c0_2] : memref<1x3x2x128xf32, #tpu.memory_space<vmem>>, vector<1x3x2x128xf32>
    %cst = arith.constant dense<0x7F800000> : vector<1x2x128xf32>
    %1 = vector.multi_reduction <minimumf>, %0, %cst [1] : vector<1x3x2x128xf32> to vector<1x2x128xf32>
    %2 = vector.shape_cast %1 : vector<1x2x128xf32> to vector<1x1x2x128xf32>
    %cst_3 = arith.constant dense<0xFF800000> : vector<1x2x128xf32>
    %3 = vector.multi_reduction <maximumf>, %0, %cst_3 [1] : vector<1x3x2x128xf32> to vector<1x2x128xf32>
    %4 = vector.shape_cast %3 : vector<1x2x128xf32> to vector<1x1x2x128xf32>
    %cst_4 = arith.constant 1.000000e+00 : f32
    %5 = vector.broadcast %cst_4 : f32 to vector<1x1x2x128xf32>
    %6 = arith.addf %4, %5 : vector<1x1x2x128xf32>
    %cst_5 = arith.constant 2.000000e-08 : f32
    %7 = vector.broadcast %cst_5 : f32 to vector<1x1x2x128xf32>
    %8 = arith.maximumf %6, %7 : vector<1x1x2x128xf32>
    %cst_6 = arith.constant 1.000000e+00 : f32
    %9 = vector.broadcast %cst_6 : f32 to vector<1x1x2x128xf32>
    %10 = arith.addf %2, %9 : vector<1x1x2x128xf32>
    %cst_7 = arith.constant 2.000000e+00 : f32
    %11 = vector.broadcast %cst_7 : f32 to vector<1x1x2x128xf32>
    %12 = arith.mulf %11, %10 : vector<1x1x2x128xf32>
    %13 = arith.divf %12, %8 : vector<1x1x2x128xf32>
    %cst_8 = arith.constant 1.000000e+00 : f32
    %14 = vector.broadcast %cst_8 : f32 to vector<1x1x2x128xf32>
    %15 = arith.subf %14, %13 : vector<1x1x2x128xf32>
    %c0_9 = arith.constant 0 : index
    %c0_10 = arith.constant 0 : index
    %c0_11 = arith.constant 0 : index
    %c0_12 = arith.constant 0 : index
    %16 = vector.load %arg3[%c0_9, %c0_10, %c0_11, %c0_12] : memref<1x1x2x128xf32, #tpu.memory_space<vmem>>, vector<1x1x2x128xf32>
    tpu.vector_store %arg3[%c0_9, %c0_10, %c0_11, %c0_12], %15 {strides = array<i32>} : memref<1x1x2x128xf32, #tpu.memory_space<vmem>>, vector<1x1x2x128xf32>,
    return
  }
  func.func @transform_0(%arg0: i32, %arg1: i32) -> (i32, i32, i32, i32) {
    %c0_i32 = arith.constant 0 : i32
    %c0_i32_0 = arith.constant 0 : i32
    %c0_i32_1 = arith.constant 0 : i32
    return %arg0, %c0_i32, %arg1, %c0_i32_0 : i32, i32, i32, i32
  }
  func.func @transform_1(%arg0: i32, %arg1: i32) -> (i32, i32, i32, i32) {
    %c0_i32 = arith.constant 0 : i32
    %c0_i32_0 = arith.constant 0 : i32
    %c0_i32_1 = arith.constant 0 : i32
    return %arg0, %c0_i32, %arg1, %c0_i32_0 : i32, i32, i32, i32
  }
}

</mosaic_0001>

<bundles_post_ra>
// kernel: tpu_custom_call.1
= control target key start
LH: loop header
LB: loop body
LE: loop exit
PB: predicated region body
PF: predicated region fallthrough
CT: control target
= control target key end

     0   :  { %6 = vsyncpa [#allocation3], 0  ;;  %s607_s0 = inlined_call_operand.hbm [shape: f32[2,3,2,128], index: 0, kind: input, shape index: {}]   ;;  %s608_s1 = inlined_call_operand.hbm [shape: f32[2,1,2,128], index: 1, kind: output, shape index: {}]  }
   0x1   :  { %8 = vsyncpa [#allocation3 + $0x1], 0 }
   0x2   :  { %9 = vsyncpa [#allocation4], 0 }
   0x3   :  { %11 = vsyncpa [#allocation4 + $0x1], 0  ;;  %s474_s6 = smov 0   ;;  %s476_s7 = smov 0  }
   0x4   :  { %s478_s8 = smov 0   ;;  %s480_s9 = smov 0  }
   0x5   :  { %s482_s10 = smov 0   ;;  %s484_s11 = smov 0  }
   0x6 LB: > { %s270_s12 = sadd.s32 4294967295, %s458_s11   ;;  %s271_s13 = sadd.s32 4294967294, %s458_s11   ;;  %s458_s11 = sphi %s484_s11, %s17_s11   ;;  %s454_s10 = sphi %s482_s10, %s619_s10   ;;  %s450_s9 = sphi %s480_s9, %s618_s9   ;;  %s446_s8 = sphi %s478_s8, %s617_s8   ;;  %s442_s7 = sphi %s476_s7, %s616_s7   ;;  %s438_s6 = sphi %s474_s6, %s615_s6  }
   0x7   : > { %s29_s14 = sadd.s32 1, %s454_s10  ;;  %s38_s15 = sadd.s32 1, %s446_s8 }
   0x8   : > { %p31_p0 = scmp.ge.s32.totalorder %s29_s14, 2  ;;  %p45_p1 = scmp.ne.s32.totalorder %s446_s8, %s442_s7 }
   0x9   : > { %p46_p2 = scmp.eq.s32.totalorder %s458_s11, 0  ;;  %p51_p3 = scmp.ne.s32.totalorder %s442_s7, %s438_s6 }
   0xa   : > { %s621_s14 = smov (%p31_p0, %s29_s14), 0  ;;  %p52_p5 = scmp.eq.s32.totalorder %s270_s12, 0 }
   0xb   : > { %p515_p4 = por %p46_p2, %p45_p1  ;;  %s33_s17 = ssub.s32 %s454_s10, %s621_s14 }
   0xc   : > { %p77_p6 = scmp.eq.s32.totalorder %s270_s12, 1  ;;  %p36_p7 = scmp.eq.s32.totalorder %s33_s17, 0 }
   0xd   : > { %p521_p8 = por %p52_p5, %p51_p3  ;;  %p83_p10 = scmp.eq.s32.totalorder %s271_s13, 1 }
   0xe   : > { %p525_p9 = por %p77_p6, %p45_p1  ;;  %p296_p13 = scmp.lt.s32.totalorder %s458_s11, 2 }
   0xf   : > { %s530_s20 = scalar_select %p36_p7, %s446_s8, %s38_s15  }
  0x10   : > { %p532_p11 = por %p83_p10, %p51_p3  ;;  %s103_s22 = sand.u32 1, %s446_s8  }
  0x11   : > { %s281_s23 = smul.u32 6, %s103_s22  ;;  %p542_p0 = pnand %p296_p13, %p515_p4 }
  0x12   : > { %s282_s24 = smul.u32 96, %s454_s10  ;;  %p275_p1 = scmp.ge.s32.totalorder %s458_s11, 1 }
  0x13   : > { %s107_s29 = scalar_lea.vmem [#allocation2], %s281_s23  ;;  %s104_s2 = scalar_lea.sflag [#allocation3], %s103_s22 }
  0x14   : > { %s114_s28 = scalar_lea.hbm %s607_s0, %s282_s24  ;;  %s115_s30 = sshll.u32 %s107_s29, 4  ;;  %s116_s30 = int_to_ptr.vmem [resolvable:$true] %s115_s30 }
  0x15   : > { %p352_p2 = pneg %p542_p0  ;;  %s363_s3 = scalar_lea.vmem %s116_s30, 96 }
  0x16   : > { %p364_p3 = scmp.ne.s32.totalorder %s116_s30, %s363_s3  ;;  %s460_s4 = smov [#allocation2]  }
  0x17   : > { %s368_s5 = sshll.u32 %s460_s4, 4  ;;  %s369_s5 = int_to_ptr.vmem [resolvable:$false] %s368_s5 }
  0x18   : > { %p366_p5 = pnand %p364_p3, %p352_p2  ;;  %s370_s12 = scalar_lea.vmem %s369_s5, 192 }
  0x19   : > { %p371_p4 = scmp.lt.s32.totalorder %s116_s30, %s369_s5  ;;  %p372_p7 = scmp.lt.s32.totalorder %s370_s12, %s363_s3 }
  0x1a   : > { %p367_p6 = pneg %p366_p5 }
  0x1b   : > { %p373_p10 = por %p372_p7, %p371_p4 }
  0x1d   : > { %p374_p13 = pnand %p373_p10, %p367_p6 }
  0x1f   : > { %377 = shalt.err (!%p374_p13)
}
  0x20   : > { %s461_s13 = smov 32   ;;  %s462_s15 = smov 2  }
  0x21   : > { %291 = dma.hbm_to_vmem [thread:$0]  (!%p542_p0), %s114_s28, 96, %s116_s30, %s104_s2, %s461_s13, %s461_s13, %s462_s15  }
  0x22   : > { %p123_p12 = scmp.lt.s32.totalorder %s458_s11, 3 }
  0x24   : > { %p124_p2 = pnand %p275_p1, %p123_p12 }
  0x25   : > { %s558_s16 = sand.u32 (!%p124_p2), 1, %s442_s7  }
  0x26   : > { %127 = sbr.rel (%p124_p2) target bundleno = 85 (0x55), region = 24  ;;  %s130_s22 = scalar_lea.sflag (!%p124_p2), [#allocation3], %s558_s16 }
  0x27   : > { %s283_s17 = smul.u32 (!%p124_p2), 6, %s558_s16 }
  0x29   : > { %s133_s23 = scalar_lea.vmem (!%p124_p2), [#allocation2], %s283_s17 }
  0x2b   : > { %429 = dma.done.wait (%p521_p8), %s130_s22, 96  }
  0x2c   : > { %431 = vsyncadd (%p521_p8), %s130_s22, 4294967200  ;;  %vm155_vm0 = vcmask 1041408   ;;  %v152_v0 = vld [vmem:[%s133_s23] sm:$0x3]  ;;  %v153_v1 = vld [vmem:[%s133_s23 + $0x2] sm:$0x3] }
  0x2d   : > { %v154_v2 = vld [vmem:[%s133_s23 + $0x4] sm:$0x3]  ;;  %v161_v3 = vsel %vm155_vm0, %v152_v0, -inf  ;;  %v162_v4 = vsel %vm155_vm0, %v153_v1, -inf  ;;  %v156_v8 = vsel %vm155_vm0, %v152_v0, inf  ;;  %v157_v9 = vsel %vm155_vm0, %v153_v1, inf }
  0x2e   : > { %v163_v5 = vsel %vm155_vm0, %v154_v2, -inf  ;;  %v164_v6 = vmax.f32 %v161_v3, %v162_v4  ;;  %v159_v11 = vmin.f32 %v156_v8, %v157_v9  ;;  %v158_v13 = vsel %vm155_vm0, %v154_v2, inf  ;;  %s276_s18 = sshll.u32 %s558_s16, 1  ;;  %s278_s26 = sshll.u32 %s450_s9, 5 }
  0x2f   : > { %s151_s24 = scalar_lea.vmem [#allocation5], %s276_s18  ;;  %s187_s29 = scalar_lea.hbm %s608_s1, %s278_s26 }
  0x30   : > { %v165_v7 = vmax.f32 %v164_v6, %v163_v5  ;;  %v160_v14 = vmin.f32 %v159_v11, %v158_v13  ;;  %s189_s25 = sshll.u32 %s151_s24, 4  ;;  %s175_s30 = scalar_lea.sflag [#allocation4], %s558_s16  ;;  %s190_s25 = int_to_ptr.vmem [resolvable:$true] %s189_s25 }
  0x31   : > { %s378_s2 = scalar_lea.vmem %s190_s25, 32  ;;  %s463_s3 = smov [#allocation5]  }
  0x32   : > { %v166_v10 = vadd.f32 1.0, %v165_v7  ;;  %v168_v15 = vadd.f32 1.0, %v160_v14  ;;  %p379_p8 = scmp.ne.s32.totalorder %s190_s25, %s378_s2  ;;  %s382_s4 = sshll.u32 %s463_s3, 4  ;;  %s383_s4 = int_to_ptr.vmem [resolvable:$false] %s382_s4 }
  0x33   : > { %s384_s5 = scalar_lea.vmem %s383_s4, 64  ;;  %p385_p1 = scmp.lt.s32.totalorder %s190_s25, %s383_s4 }
  0x34   : > { %v167_v12 = vmax.f32 %v166_v10, 2e-08  ;;  %v169_v16 = vmul.f32 2.0, %v168_v15  ;;  %p380_p12 = pnand %p379_p8, %p525_p9  ;;  %p386_p3 = scmp.lt.s32.totalorder %s384_s5, %s378_s2 }
  0x36   : > { %348 = vrcp.f32 %v167_v12  ;;  %p381_p0 = pneg %p380_p12  ;;  %p387_p5 = por %p386_p3, %p385_p1 }
  0x38   : > { %p388_p6 = pnand %p387_p5, %p381_p0 }
  0x43   : > { %v349_v17 = vpop.eup %348 }
  0x44   : > { %v171_v18 = vmul.f32 %v349_v17, %v169_v16 }
  0x46   : > { %v172_v19 = vsub.f32 1.0, %v171_v18 }
  0x48   : > { %173 = vst [vmem:[%s151_s24] sm:$0x3] %v172_v19 }
  0x49   : > { %391 = shalt.err (!%p388_p6)
}
  0x4a   : > { %s392_s9 = scalar_lea.hbm %s187_s29, 32  ;;  %s396_s15 = scalar_lea.hbm %s608_s1, 64 }
  0x4b   : > { %p393_p4 = scmp.ne.s32.totalorder %s187_s29, %s392_s9  ;;  %p397_p13 = scmp.lt.s32.totalorder %s187_s29, %s608_s1 }
  0x4c   : > { %p398_p2 = scmp.lt.s32.totalorder %s396_s15, %s392_s9 }
  0x4d   : > { %p394_p7 = pnand %p393_p4, %p525_p9 }
  0x4e   : > { %p399_p8 = por %p398_p2, %p397_p13 }
  0x4f   : > { %p395_p10 = pneg %p394_p7 }
  0x51   : > { %p400_p12 = pnand %p399_p8, %p395_p10 }
  0x53   : > { %403 = shalt.err (!%p400_p12)
}
  0x54   : > { %286 = dma.vmem_to_hbm [thread:$0]  (%p525_p9), %s190_s25, 32, %s187_s29, %s175_s30  }
  0x55 PF: > { %s201_s22 = sand.u32 1, %s438_s6   ;;  %p614_p0 = scmp.ge.s32.totalorder %s458_s11, 2 }
  0x56   : > { %s202_s23 = scalar_lea.sflag [#allocation4], %s201_s22 }
  0x57   : > { %p293_p1 = pnand %p614_p0, %p532_p11 }
  0x59   : > { %p294_p3 = pneg %p293_p1 }
  0x5b   : > { %433 = dma.done.wait (%p294_p3), %s202_s23, 32  }
  0x5c   : > { %435 = vsyncadd (%p294_p3), %s202_s23, 4294967264  ;;  %s17_s11 = sadd.s32 1, %s458_s11   ;;  %s615_s6 = smov %s442_s7 }
  0x5d   : > { %p14_p5 = scmp.ge.s32.totalorder %s17_s11, 4   ;;  %s616_s7 = smov %s446_s8 }
  0x5e   : > { %s617_s8 = smov %s530_s20  ;;  %s618_s9 = smov %s454_s10 }
  0x5f   : > { %s619_s10 = smov %s621_s14  ;;  %16 = sbr.rel (!%p14_p5) target bundleno = 6 (0x6), region = 69 }
  0x64   :  { %207 = vsyncpa [#allocation3], 1 }
  0x65   :  { %209 = vsyncpa [#allocation3 + $0x1], 1 }
  0x66   :  { %210 = vsyncpa [#allocation4], 1 }
  0x67   :  { %212 = vsyncpa [#allocation4 + $0x1], 1 }

</bundles_post_ra>
